<compile_context>
chip_gen: v7x
topology: tpu7x:2x2x1
jax: 0.10.0
libtpu: 0.0.40
codegen_flags: <defaults>
</compile_context>

<pallas_src>
import functools

import jax
import jax.numpy as jnp
from jax.experimental import pallas as pl
from jax.experimental.pallas import tpu as pltpu

LANES = 128          # padded width for input / hidden / head-output dims
NEG_INF = -1e30


def _ffn_kernel(x_ref, w1_ref, wh_ref, u_ref, out_ref, *, num_actions):
    # x_ref  : (1, 128)   observation, lane D holds the 1.0 bias lane
    # w1_ref : (128, 128) augmented first-layer weight (bias row folded in)
    # wh_ref : (128, 128) fused policy+value head weight (biases folded in)
    # u_ref  : (1, 128)   uniform(0,1) randoms for Gumbel-max sampling
    # out_ref: (1, 128)   lane0=log_prob(chosen), lane1=value, lane2=action
    x = x_ref[...]

    # hidden layer + relu gate (bias folded into w1 via the x bias lane;
    # hidden lane H is forced to 1.0 to carry the head biases downstream).
    h = jnp.maximum(
        jnp.dot(x, w1_ref[...], preferred_element_type=jnp.float32), 0.0)   # (1, 128)

    # fused policy+value head: one matmul.
    #   y[:, :A]  = policy logits (pre-gate)
    #   y[:, A]   = state value
    #   y[:, A+1:] = padding (zeros)
    y = jnp.dot(h, wh_ref[...], preferred_element_type=jnp.float32)         # (1, 128)

    lane = jax.lax.broadcasted_iota(jnp.int32, y.shape, 1)                   # (1, 128)
    valid = lane < num_actions

    value = y[:, num_actions:num_actions + 1]                                # (1, 1)

    # relu gate on the policy logits (matches gate(policy_head_layer(...))),
    # then mask padded action lanes to -inf so they vanish from softmax/argmax.
    logits = jnp.where(valid, jnp.maximum(y, 0.0), NEG_INF)                  # (1, 128)

    # log-softmax over the action dimension
    m = jnp.max(logits, axis=-1, keepdims=True)
    z = logits - m
    lse = jnp.log(jnp.sum(jnp.exp(z), axis=-1, keepdims=True))
    log_probs = z - lse                                                      # (1, 128)

    # Categorical sample via Gumbel-max on the (unnormalized) log-probs.
    u = jnp.clip(u_ref[...], 1e-7, 1.0 - 1e-7)
    gumbel = -jnp.log(-jnp.log(u))                                           # (1, 128)
    score = jnp.where(valid, logits + gumbel, NEG_INF)
    smax = jnp.max(score, axis=-1, keepdims=True)
    cand = jnp.where(score >= smax, lane, LANES)        # first argmax on ties
    action = jnp.min(cand, axis=-1, keepdims=True)                           # (1, 1) int32

    # gather log_prob of the chosen action
    chosen_lp = jnp.sum(jnp.where(lane == action, log_probs, 0.0),
                        axis=-1, keepdims=True)                              # (1, 1)

    # single lane-dense output slab
    slab = jnp.where(lane == 0, chosen_lp, 0.0)
    slab = jnp.where(lane == 1, value, slab)
    slab = jnp.where(lane == 2, action.astype(jnp.float32), slab)
    out_ref[...] = slab


def pack_params(params, input_dim, hidden, output_dim):
    """Fold biases + fuse heads into two dense (128,128) weight matrices."""
    w1, b1 = params["w1"], params["b1"]   # (D,H), (1,H)
    wp, bp = params["wp"], params["bp"]   # (H,A), (1,A)
    wv, bv = params["wv"], params["bv"]   # (H,1), (1,1)

    w1p = jnp.zeros((LANES, LANES), jnp.float32)
    w1p = w1p.at[:input_dim, :hidden].set(w1)
    w1p = w1p.at[input_dim, :hidden].set(b1[0])      # bias row (x bias lane = 1)
    w1p = w1p.at[input_dim, hidden].set(1.0)         # hidden "bias lane" -> relu(1)=1

    whp = jnp.zeros((LANES, LANES), jnp.float32)
    whp = whp.at[:hidden, :output_dim].set(wp)       # policy weights
    whp = whp.at[hidden, :output_dim].set(bp[0])     # policy bias via hidden bias lane
    whp = whp.at[:hidden, output_dim].set(wv[:, 0])  # value weights (lane A)
    whp = whp.at[hidden, output_dim].set(bv[0, 0])   # value bias
    return w1p, whp


def fully_connected_feed_forward(x, w1_packed, wh_packed, key, *,
                                 input_dim, output_dim):
    """x: (input_dim,) float32 observation. Returns dict {'a','log_probs','V'}."""
    x_pad = jnp.zeros((1, LANES), jnp.float32)
    x_pad = x_pad.at[0, :input_dim].set(x.astype(jnp.float32))
    x_pad = x_pad.at[0, input_dim].set(1.0)          # bias lane

    # TODO(synk): hardware PRNG (pltpu.prng_seed / prng_random_bits) has no
    # interpret-mode lowering, so uniforms are drawn host-side and passed in.
    u = jax.random.uniform(key, (1, LANES), jnp.float32,
                           minval=1e-7, maxval=1.0 - 1e-7)

    vmem = functools.partial(pl.BlockSpec, memory_space=pltpu.MemorySpace.VMEM)
    slab = pl.pallas_call(
        functools.partial(_ffn_kernel, num_actions=output_dim),
        out_shape=jax.ShapeDtypeStruct((1, LANES), jnp.float32),
        in_specs=[vmem(), vmem(), vmem(), vmem()],   # x_pad, w1p, whp, u
        out_specs=vmem(),
    )(x_pad, w1_packed, wh_packed, u)

    a = slab[:, 2:3].astype(jnp.int32)   # torch returns int64; cast outside if needed
    log_probs = slab[:, 0:1]
    v = slab[:, 1:2]
    return {"a": a, "log_probs": log_probs, "V": v}


def init_params(key, input_dim, hidden, output_dim):
    # Deterministic synthetic init (the original uses layer_init/orthogonal;
    # we just need deterministic weights of the right shapes).
    k1, k2, k3 = jax.random.split(key, 3)
    scale = 0.1
    return {
        "w1": scale * jax.random.normal(k1, (input_dim, hidden), jnp.float32),
        "b1": jnp.zeros((1, hidden), jnp.float32),
        "wp": scale * jax.random.normal(k2, (hidden, output_dim), jnp.float32),
        "bp": jnp.zeros((1, output_dim), jnp.float32),
        "wv": scale * jax.random.normal(k3, (hidden, 1), jnp.float32),
        "bv": jnp.zeros((1, 1), jnp.float32),
    }
    # TODO(synk): only the default single hidden layer (hidden_units=(32,)) is
    # baked in; deeper stacks would chain more augmented matmuls the same way.
    # TODO(synk): batch=1 matches the torch module; a batched variant would
    # tile the batch over a "parallel" grid axis with weights VMEM-resident.


if __name__ == "__main__":
    input_dim, hidden, output_dim = 16, 32, 8

    key = jax.random.PRNGKey(0)
    pkey, xkey, skey = jax.random.split(key, 3)
    params = init_params(pkey, input_dim, hidden, output_dim)
    x = jax.random.normal(xkey, (input_dim,), jnp.float32)

    w1_packed, wh_packed = pack_params(params, input_dim, hidden, output_dim)

    out = fully_connected_feed_forward(
        x, w1_packed, wh_packed, skey,
        input_dim=input_dim, output_dim=output_dim)
    out = jax.tree_util.tree_map(jax.block_until_ready, out)

    # pure-JAX reference for the deterministic parts
    h_ref = jnp.maximum(x[None, :] @ params["w1"] + params["b1"], 0.0)
    logits_ref = jnp.maximum(h_ref @ params["wp"] + params["bp"], 0.0)
    v_ref = h_ref @ params["wv"] + params["bv"]
    logp_ref = jax.nn.log_softmax(logits_ref, axis=-1)

    a = int(out["a"][0, 0])
    lp = float(out["log_probs"][0, 0])
    v = float(out["V"][0, 0])

    assert out["a"].shape == (1, 1) and out["log_probs"].shape == (1, 1)
    assert out["V"].shape == (1, 1)
    assert 0 <= a < output_dim
    assert lp <= 0.0
    assert jnp.allclose(v, v_ref[0, 0], atol=1e-5), (v, float(v_ref[0, 0]))
    assert jnp.allclose(lp, logp_ref[0, a], atol=1e-5), (lp, float(logp_ref[0, a]))
    print("KERNEL_OK")
</pallas_src>

<mosaic_0001>
module attributes {stable_mosaic.version = 11 : i64} {
  func.func @_ffn_kernel(%arg0: memref<1x128xf32, #tpu.memory_space<vmem>>, %arg1: memref<128x128xf32, #tpu.memory_space<vmem>>, %arg2: memref<128x128xf32, #tpu.memory_space<vmem>>, %arg3: memref<1x128xf32, #tpu.memory_space<vmem>>, %arg4: memref<1x128xf32, #tpu.memory_space<vmem>>) attributes {dimension_semantics = [], scalar_prefetch = 0 : i64, scratch_operands = 0 : i64, tpu.core_type = #tpu.core_type<tc>} {
    %c0 = arith.constant 0 : index
    %c0_0 = arith.constant 0 : index
    %0 = vector.load %arg0[%c0, %c0_0] : memref<1x128xf32, #tpu.memory_space<vmem>>, vector<1x128xf32>
    %c0_1 = arith.constant 0 : index
    %c0_2 = arith.constant 0 : index
    %1 = vector.load %arg1[%c0_1, %c0_2] : memref<128x128xf32, #tpu.memory_space<vmem>>, vector<128x128xf32>
    %cst = arith.constant dense<0.000000e+00> : vector<1x128xf32>
    %2 = tpu.matmul %0, %1, %cst {dimension_numbers = #tpu.dot_dimension_numbers<[1], [0], [0], [1], [0, 0, 1, 1], [], []>} : vector<1x128xf32>, vector<128x128xf32>, vector<1x128xf32> -> vector<1x128xf32>
    %cst_3 = arith.constant 0.000000e+00 : f32
    %3 = vector.broadcast %cst_3 : f32 to vector<1x128xf32>
    %4 = arith.maximumf %2, %3 : vector<1x128xf32>
    %c0_4 = arith.constant 0 : index
    %c0_5 = arith.constant 0 : index
    %5 = vector.load %arg2[%c0_4, %c0_5] : memref<128x128xf32, #tpu.memory_space<vmem>>, vector<128x128xf32>
    %cst_6 = arith.constant dense<0.000000e+00> : vector<1x128xf32>
    %6 = tpu.matmul %4, %5, %cst_6 {dimension_numbers = #tpu.dot_dimension_numbers<[1], [0], [0], [1], [0, 0, 1, 1], [], []>} : vector<1x128xf32>, vector<128x128xf32>, vector<1x128xf32> -> vector<1x128xf32>
    %7 = tpu.iota {dimensions = array<i32: 1>} : vector<1x128xi32>
    %c8_i32 = arith.constant 8 : i32
    %8 = vector.broadcast %c8_i32 : i32 to vector<1x128xi32>
    %9 = arith.cmpi slt, %7, %8 : vector<1x128xi32>
    %10 = vector.extract_strided_slice %6 {offsets = [0, 8], sizes = [1, 1], strides = [1, 1]} : vector<1x128xf32> to vector<1x1xf32>
    %cst_7 = arith.constant 0.000000e+00 : f32
    %11 = vector.broadcast %cst_7 : f32 to vector<1x128xf32>
    %12 = arith.maximumf %6, %11 : vector<1x128xf32>
    %cst_8 = arith.constant -1.000000e+30 : f32
    %13 = vector.broadcast %cst_8 : f32 to vector<1x128xf32>
    %14 = arith.select %9, %12, %13 : vector<1x128xi1>, vector<1x128xf32>
    %cst_9 = arith.constant dense<0xFF800000> : vector<1xf32>
    %15 = vector.multi_reduction <maximumf>, %14, %cst_9 [1] : vector<1x128xf32> to vector<1xf32>
    %16 = vector.shape_cast %15 : vector<1xf32> to vector<1x1xf32>
    %17 = vector.broadcast %16 : vector<1x1xf32> to vector<1x128xf32>
    %18 = arith.subf %14, %17 : vector<1x128xf32>
    %19 = math.exp %18 : vector<1x128xf32>
    %cst_10 = arith.constant dense<0.000000e+00> : vector<1xf32>
    %20 = vector.multi_reduction <add>, %19, %cst_10 [1] : vector<1x128xf32> to vector<1xf32>
    %21 = vector.shape_cast %20 : vector<1xf32> to vector<1x1xf32>
    %22 = math.log %21 : vector<1x1xf32>
    %23 = vector.broadcast %22 : vector<1x1xf32> to vector<1x128xf32>
    %24 = arith.subf %18, %23 : vector<1x128xf32>
    %c0_11 = arith.constant 0 : index
    %c0_12 = arith.constant 0 : index
    %25 = vector.load %arg3[%c0_11, %c0_12] : memref<1x128xf32, #tpu.memory_space<vmem>>, vector<1x128xf32>
    %cst_13 = arith.constant 1.000000e-07 : f32
    %cst_14 = arith.constant 0.99999988 : f32
    %26 = vector.broadcast %cst_13 : f32 to vector<1x128xf32>
    %27 = arith.maximumf %26, %25 : vector<1x128xf32>
    %28 = vector.broadcast %cst_14 : f32 to vector<1x128xf32>
    %29 = arith.minimumf %28, %27 : vector<1x128xf32>
    %30 = math.log %29 : vector<1x128xf32>
    %cst_15 = arith.constant 0.000000e+00 : f32
    %31 = vector.broadcast %cst_15 : f32 to vector<1x128xf32>
    %32 = arith.subf %31, %30 : vector<1x128xf32>
    %33 = math.log %32 : vector<1x128xf32>
    %cst_16 = arith.constant 0.000000e+00 : f32
    %34 = vector.broadcast %cst_16 : f32 to vector<1x128xf32>
    %35 = arith.subf %34, %33 : vector<1x128xf32>
    %36 = arith.addf %14, %35 : vector<1x128xf32>
    %cst_17 = arith.constant -1.000000e+30 : f32
    %37 = vector.broadcast %cst_17 : f32 to vector<1x128xf32>
    %38 = arith.select %9, %36, %37 : vector<1x128xi1>, vector<1x128xf32>
    %cst_18 = arith.constant dense<0xFF800000> : vector<1xf32>
    %39 = vector.multi_reduction <maximumf>, %38, %cst_18 [1] : vector<1x128xf32> to vector<1xf32>
    %40 = vector.shape_cast %39 : vector<1xf32> to vector<1x1xf32>
    %41 = vector.broadcast %40 : vector<1x1xf32> to vector<1x128xf32>
    %42 = arith.cmpf oge, %38, %41 : vector<1x128xf32>
    %c128_i32 = arith.constant 128 : i32
    %43 = vector.broadcast %c128_i32 : i32 to vector<1x128xi32>
    %44 = arith.select %42, %7, %43 : vector<1x128xi1>, vector<1x128xi32>
    %cst_19 = arith.constant dense<2147483647> : vector<1xi32>
    %45 = vector.multi_reduction <minsi>, %44, %cst_19 [1] : vector<1x128xi32> to vector<1xi32>
    %46 = vector.shape_cast %45 : vector<1xi32> to vector<1x1xi32>
    %47 = vector.broadcast %46 : vector<1x1xi32> to vector<1x128xi32>
    %48 = arith.cmpi eq, %7, %47 : vector<1x128xi32>
    %cst_20 = arith.constant 0.000000e+00 : f32
    %49 = vector.broadcast %cst_20 : f32 to vector<1x128xf32>
    %50 = arith.select %48, %24, %49 : vector<1x128xi1>, vector<1x128xf32>
    %cst_21 = arith.constant dense<0.000000e+00> : vector<1xf32>
    %51 = vector.multi_reduction <add>, %50, %cst_21 [1] : vector<1x128xf32> to vector<1xf32>
    %52 = vector.shape_cast %51 : vector<1xf32> to vector<1x1xf32>
    %c0_i32 = arith.constant 0 : i32
    %53 = vector.broadcast %c0_i32 : i32 to vector<1x128xi32>
    %54 = arith.cmpi eq, %7, %53 : vector<1x128xi32>
    %cst_22 = arith.constant 0.000000e+00 : f32
    %55 = vector.shape_cast %52 : vector<1x1xf32> to vector<1x1xf32>
    %56 = vector.broadcast %55 : vector<1x1xf32> to vector<1x128xf32>
    %57 = vector.broadcast %cst_22 : f32 to vector<1x128xf32>
    %58 = arith.select %54, %56, %57 : vector<1x128xi1>, vector<1x128xf32>
    %c1_i32 = arith.constant 1 : i32
    %59 = vector.broadcast %c1_i32 : i32 to vector<1x128xi32>
    %60 = arith.cmpi eq, %7, %59 : vector<1x128xi32>
    %61 = vector.shape_cast %10 : vector<1x1xf32> to vector<1x1xf32>
    %62 = vector.broadcast %61 : vector<1x1xf32> to vector<1x128xf32>
    %63 = arith.select %60, %62, %58 : vector<1x128xi1>, vector<1x128xf32>
    %c2_i32 = arith.constant 2 : i32
    %64 = vector.broadcast %c2_i32 : i32 to vector<1x128xi32>
    %65 = arith.cmpi eq, %7, %64 : vector<1x128xi32>
    %66 = arith.sitofp %46 : vector<1x1xi32> to vector<1x1xf32>
    %67 = vector.shape_cast %66 : vector<1x1xf32> to vector<1x1xf32>
    %68 = vector.broadcast %67 : vector<1x1xf32> to vector<1x128xf32>
    %69 = arith.select %65, %68, %63 : vector<1x128xi1>, vector<1x128xf32>
    %c0_23 = arith.constant 0 : index
    %c0_24 = arith.constant 0 : index
    %70 = vector.load %arg4[%c0_23, %c0_24] : memref<1x128xf32, #tpu.memory_space<vmem>>, vector<1x128xf32>
    tpu.vector_store %arg4[%c0_23, %c0_24], %69 {strides = array<i32>} : memref<1x128xf32, #tpu.memory_space<vmem>>, vector<1x128xf32>,
    return
  }
}

</mosaic_0001>

<bundles_post_ra>
// kernel: tpu_custom_call.1
= control target key start
LH: loop header
LB: loop body
LE: loop exit
PB: predicated region body
PF: predicated region fallthrough
CT: control target
= control target key end

     0   :  { %9 = vsyncpa [#allocation3], 0  ;;  %s700_s0 = inlined_call_operand.hbm [shape: f32[1,128], index: 0, kind: input, shape index: {}]   ;;  %s701_s1 = inlined_call_operand.hbm [shape: f32[128,128], index: 1, kind: input, shape index: {}]   ;;  %s702_s2 = inlined_call_operand.hbm [shape: f32[128,128], index: 2, kind: input, shape index: {}]   ;;  %s703_s3 = inlined_call_operand.vmem [shape: f32[1,128], index: 3, kind: input, shape index: {}]   ;;  %s704_s4 = inlined_call_operand.hbm [shape: f32[1,128], index: 4, kind: output, shape index: {}]  }
   0x1   :  { %10 = vsyncpa [#allocation6], 0 }
   0x2   :  { %11 = vsyncpa [#allocation4], 0  ;;  %s579_s15 = smov [#allocation5]   ;;  %s485_s19 = scalar_lea.hbm %s701_s1, 2048 }
   0x3   :  { %s27_s16 = sshll.u32 %s579_s15, 4  ;;  %p486_p0 = scmp.ne.s32.totalorder %s701_s1, %s485_s19  ;;  %s28_s16 = int_to_ptr.vmem [resolvable:$true] %s27_s16 }
   0x4   :  { %p489_p1 = scmp.lt.u32.totalorder %s485_s19, %s701_s1 }
   0x6   :  { %p491_p2 = pnand %p489_p1, %p486_p0 }
   0x8   :  { %494 = shalt.err (!%p491_p2)
}
   0x9   :  { %s495_s24 = scalar_lea.vmem %s28_s16, 2048  ;;  %p500_p4 = scmp.lt.s32.totalorder %s28_s16, %s28_s16 }
   0xa   :  { %p496_p3 = scmp.ne.s32.totalorder %s28_s16, %s495_s24  ;;  %p501_p5 = scmp.lt.s32.totalorder %s495_s24, %s495_s24 }
   0xc   :  { %p502_p6 = por %p501_p5, %p500_p4 }
   0xe   :  { %p503_p7 = pnand %p502_p6, %p496_p3 }
  0x10   :  { %506 = shalt.err (!%p503_p7)
}
  0x11   :  { %s580_s25 = smov 128   ;;  %s581_s26 = smov 8  }
  0x12   :  { %33 = dma.hbm_to_vmem [thread:$0]  %s701_s1, 2048, %s28_s16, [#allocation6], %s580_s25, %s580_s25, %s581_s26  }
  0x13   :  { %s582_s29 = smov [#allocation2]   ;;  %s583_s5 = smov [#allocation7]  }
  0x14   :  { %s18_s30 = sshll.u32 %s582_s29, 4  ;;  %s39_s6 = sshll.u32 %s583_s5, 4  ;;  %s19_s30 = int_to_ptr.vmem [resolvable:$true] %s18_s30  ;;  %s40_s6 = int_to_ptr.vmem [resolvable:$true] %s39_s6 }
  0x15   :  { %s507_s9 = scalar_lea.hbm %s700_s0, 16 }
  0x16   :  { %p508_p8 = scmp.ne.s32.totalorder %s700_s0, %s507_s9  ;;  %p511_p9 = scmp.lt.u32.totalorder %s507_s9, %s700_s0 }
  0x18   :  { %p513_p10 = pnand %p511_p9, %p508_p8 }
  0x1a   :  { %516 = shalt.err (!%p513_p10)
}
  0x1b   :  { %s517_s1 = scalar_lea.vmem %s19_s30, 16  ;;  %s521_s14 = scalar_lea.vmem %s19_s30, 32 }
  0x1c   :  { %p518_p11 = scmp.ne.s32.totalorder %s19_s30, %s517_s1  ;;  %p522_p12 = scmp.lt.s32.totalorder %s19_s30, %s19_s30 }
  0x1d   :  { %p523_p13 = scmp.lt.s32.totalorder %s521_s14, %s517_s1 }
  0x1f   :  { %p524_p0 = por %p523_p13, %p522_p12 }
  0x21   :  { %p525_p1 = pnand %p524_p0, %p518_p11 }
  0x23   :  { %528 = shalt.err (!%p525_p1)
}
  0x24   :  { %21 = dma.hbm_to_vmem [thread:$0]  %s700_s0, 16, %s19_s30, [#allocation3]  }
  0x25   :  { %s529_s19 = scalar_lea.hbm %s702_s2, 2048 }
  0x26   :  { %p530_p2 = scmp.ne.s32.totalorder %s702_s2, %s529_s19  ;;  %p533_p3 = scmp.lt.u32.totalorder %s529_s19, %s702_s2 }
  0x28   :  { %p535_p4 = pnand %p533_p3, %p530_p2 }
  0x2a   :  { %538 = shalt.err (!%p535_p4)
}
  0x2b   :  { %s539_s24 = scalar_lea.vmem %s40_s6, 2048  ;;  %p544_p6 = scmp.lt.s32.totalorder %s40_s6, %s40_s6 }
  0x2c   :  { %p540_p5 = scmp.ne.s32.totalorder %s40_s6, %s539_s24  ;;  %p545_p7 = scmp.lt.s32.totalorder %s539_s24, %s539_s24 }
  0x2e   :  { %p546_p8 = por %p545_p7, %p544_p6 }
  0x30   :  { %p547_p9 = pnand %p546_p8, %p540_p5 }
  0x32   :  { %550 = shalt.err (!%p547_p9)
}
  0x33   :  { %45 = dma.hbm_to_vmem [thread:$0]  %s702_s2, 2048, %s40_s6, [#allocation6], %s580_s25, %s580_s25, %s581_s26  }
  0x34   :  { %573 = dma.done.wait [#allocation3], 16  }
  0x35   :  { %574 = vsyncadd [#allocation3], 4294967280 }
  0x36   :  { %575 = dma.done.wait [#allocation6], 4096  }
  0x37   :  { %576 = vsyncadd [#allocation6], 4294963200  ;;  %v584_v0 = vmov 0.0|0.0   ;;  %vm585_vm0 = vmmov 0   ;;  %v586_v1 = vmov 0.0   ;;  %v58_v2 = vld [vmem:[#allocation5] sm:$0xff]  ;;  %v231_v60 = vlaneseq }
  0x38   :  { %418 = vmatprep.subr.bf16.mxu0 %v584_v0  ;;  %380 = vmatprep.mubr.msk.f32.mxu0 %vm585_vm0, %v586_v1  ;;  %v59_v3 = vld [vmem:[#allocation5 + $0x8] sm:$0xff]  ;;  %v60_v4 = vld [vmem:[#allocation5 + $0x10] sm:$0xff]  ;;  %v61_v6 = vld [vmem:[#allocation5 + $0x18] sm:$0xff]  ;;  %vm236_vm2 = vcmask 1040384  }
  0x39   :  { %442 = vmatprep.subr.bf16.mxu1 %v584_v0  ;;  %415 = vmatprep.mubr.msk.f32.mxu1 %vm585_vm0, %v586_v1  ;;  %v419_v5 = vpack.c.bf16 %v59_v3, %v58_v2  ;;  %v422_v7 = vpack.c.bf16 %v61_v6, %v60_v4  ;;  %v62_v8 = vld [vmem:[#allocation5 + $0x20] sm:$0xff]  ;;  %v63_v9 = vld [vmem:[#allocation5 + $0x28] sm:$0xff]  ;;  %v147_v12 = vld [vmem:[#allocation7 + $0x10] sm:$0xff]  ;;  %v675_v62 = vand.u32 127, %v231_v60 }
  0x3a   :  { %v145_v10 = vld [vmem:[#allocation7] sm:$0xff]  ;;  %v146_v11 = vld [vmem:[#allocation7 + $0x8] sm:$0xff]  ;;  %v148_v13 = vld [vmem:[#allocation7 + $0x18] sm:$0xff]  ;;  %v425_v14 = vpack.c.bf16 %v63_v9, %v62_v8 }
  0x3b   :  { %420 = vmatpush3.bf16.msra.mxu0 %v419_v5  ;;  %v443_v15 = vpack.c.bf16 %v146_v11, %v145_v10  ;;  %v64_v16 = vld [vmem:[#allocation5 + $0x30] sm:$0xff]  ;;  %v65_v17 = vld [vmem:[#allocation5 + $0x38] sm:$0xff]  ;;  %v446_v18 = vpack.c.bf16 %v148_v13, %v147_v12  ;;  %v149_v19 = vld [vmem:[#allocation7 + $0x20] sm:$0xff]  ;;  %vm233_vm1 = vcmp.lt.s32.totalorder %v675_v62, 8  ;;  %vm285_vm6 = vcmp.eq.s32.totalorder %v675_v62, 0 }
  0x3c   :  { %421 = vmatprep.subr.bf16.mxu0 %v584_v0  ;;  %v150_v20 = vld [vmem:[#allocation7 + $0x28] sm:$0xff]  ;;  %v428_v21 = vpack.c.bf16 %v65_v17, %v64_v16  ;;  %v66_v22 = vld [vmem:[#allocation5 + $0x40] sm:$0xff]  ;;  %v151_v25 = vld [vmem:[#allocation7 + $0x30] sm:$0xff]  ;;  %vm287_vm7 = vcmp.eq.s32.totalorder %v675_v62, 1  ;;  %vm294_vm8 = vcmp.eq.s32.totalorder %v675_v62, 2 }
  0x3d   :  { %444 = vmatpush3.bf16.msra.mxu1 %v443_v15  ;;  %v67_v23 = vld [vmem:[#allocation5 + $0x48] sm:$0xff]  ;;  %v449_v24 = vpack.c.bf16 %v150_v20, %v149_v19  ;;  %v152_v26 = vld [vmem:[#allocation7 + $0x38] sm:$0xff]  ;;  %v68_v28 = vld [vmem:[#allocation5 + $0x50] sm:$0xff]  ;;  %v587_v19 = vmov 8  }
  0x3e   :  { %445 = vmatprep.subr.bf16.mxu1 %v584_v0  ;;  %v431_v27 = vpack.c.bf16 %v67_v23, %v66_v22  ;;  %v69_v29 = vld [vmem:[#allocation5 + $0x58] sm:$0xff]  ;;  %v452_v30 = vpack.c.bf16 %v152_v26, %v151_v25  ;;  %v153_v31 = vld [vmem:[#allocation7 + $0x40] sm:$0xff]  ;;  %v154_v32 = vld [vmem:[#allocation7 + $0x48] sm:$0xff]  ;;  %476 = vset.pattern.permute.xlu0 %v587_v19 }
  0x3f   :  { %423 = vmatpush3.bf16.msra.mxu0 %v422_v7  ;;  %v434_v33 = vpack.c.bf16 %v69_v29, %v68_v28  ;;  %v70_v34 = vld [vmem:[#allocation5 + $0x60] sm:$0xff]  ;;  %v71_v35 = vld [vmem:[#allocation5 + $0x68] sm:$0xff]  ;;  %v455_v36 = vpack.c.bf16 %v154_v32, %v153_v31  ;;  %v155_v37 = vld [vmem:[#allocation7 + $0x50] sm:$0xff] }
  0x40   :  { %424 = vmatprep.subr.bf16.mxu0 %v584_v0  ;;  %v156_v38 = vld [vmem:[#allocation7 + $0x58] sm:$0xff]  ;;  %v437_v39 = vpack.c.bf16 %v71_v35, %v70_v34  ;;  %v72_v40 = vld [vmem:[#allocation5 + $0x70] sm:$0xff]  ;;  %v157_v43 = vld [vmem:[#allocation7 + $0x60] sm:$0xff] }
  0x41   :  { %447 = vmatpush3.bf16.msra.mxu1 %v446_v18  ;;  %v73_v41 = vld [vmem:[#allocation5 + $0x78] sm:$0xff]  ;;  %v458_v42 = vpack.c.bf16 %v156_v38, %v155_v37  ;;  %v158_v44 = vld [vmem:[#allocation7 + $0x68] sm:$0xff]  ;;  %v159_v48 = vld [vmem:[#allocation7 + $0x70] sm:$0xff] }
  0x42   :  { %448 = vmatprep.subr.bf16.mxu1 %v584_v0  ;;  %v440_v45 = vpack.c.bf16 %v73_v41, %v72_v40  ;;  %v461_v46 = vpack.c.bf16 %v158_v44, %v157_v43  ;;  %v57_v47 = vld [vmem:[#allocation2] sm:$0x1] }
  0x43   :  { %426 = vmatpush3.bf16.msra.mxu0 %v425_v14  ;;  %v160_v49 = vld [vmem:[#allocation7 + $0x78] sm:$0xff] }
  0x44   :  { %427 = vmatprep.subr.bf16.mxu0 %v584_v0  ;;  %v464_v50 = vpack.c.bf16 %v160_v49, %v159_v48  ;;  %v249_v54 = vld [vmem:[%s703_s3] sm:$0x1]  ;;  %s588_s3 = smov [#allocation8]  }
  0x45   :  { %450 = vmatpush3.bf16.msra.mxu1 %v449_v24  ;;  %v250_v55 = vmax.f32 %v249_v54, 1e-07  ;;  %s304_s26 = sshll.u32 %s588_s3, 4  ;;  %s305_s26 = int_to_ptr.vmem [resolvable:$true] %s304_s26 }
  0x46   :  { %451 = vmatprep.subr.bf16.mxu1 %v584_v0  ;;  %s551_s28 = scalar_lea.vmem %s305_s26, 16  ;;  %s555_s29 = scalar_lea.vmem %s305_s26, 32 }
  0x47   :  { %429 = vmatpush3.bf16.msra.mxu0 %v428_v21  ;;  %v251_v56 = vmin.f32 %v250_v55, 0.9999999  ;;  %p552_p10 = scmp.ne.s32.totalorder %s305_s26, %s551_s28  ;;  %p556_p11 = scmp.lt.s32.totalorder %s305_s26, %s305_s26 }
  0x48   :  { %430 = vmatprep.subr.bf16.mxu0 %v584_v0  ;;  %p557_p12 = scmp.lt.s32.totalorder %s555_s29, %s551_s28 }
  0x49   :  { %453 = vmatpush3.bf16.msra.mxu1 %v452_v30  ;;  %477 = vlog2.f32 %v251_v56 }
  0x4a   :  { %454 = vmatprep.subr.bf16.mxu1 %v584_v0  ;;  %p558_p13 = por %p557_p12, %p556_p11 }
  0x4b   :  { %432 = vmatpush3.bf16.msra.mxu0 %v431_v27 }
  0x4c   :  { %433 = vmatprep.subr.bf16.mxu0 %v584_v0  ;;  %p559_p0 = pnand %p558_p13, %p552_p10 }
  0x4d   :  { %456 = vmatpush3.bf16.msra.mxu1 %v455_v36 }
  0x4e   :  { %457 = vmatprep.subr.bf16.mxu1 %v584_v0 }
  0x4f   :  { %435 = vmatpush3.bf16.msra.mxu0 %v434_v33 }
  0x50   :  { %436 = vmatprep.subr.bf16.mxu0 %v584_v0 }
  0x51   :  { %459 = vmatpush3.bf16.msra.mxu1 %v458_v42 }
  0x52   :  { %460 = vmatprep.subr.bf16.mxu1 %v584_v0 }
  0x53   :  { %438 = vmatpush3.bf16.msra.mxu0 %v437_v39  ;;  %v478_v57 = vpop.eup %477 }
  0x54   :  { %439 = vmatprep.subr.bf16.mxu0 %v584_v0  ;;  %v253_v58 = vmul.f32 0.6931472, %v478_v57 }
  0x55   :  { %462 = vmatpush3.bf16.msra.mxu1 %v461_v46 }
  0x56   :  { %463 = vmatprep.subr.bf16.mxu1 %v584_v0  ;;  %v254_v59 = vsub.f32 0.0, %v253_v58 }
  0x57   :  { %441 = vmatpush3.bf16.msra.mxu0 %v440_v45 }
  0x58   :  { %479 = vlog2.f32 %v254_v59 }
  0x59   :  { %465 = vmatpush3.bf16.msra.mxu1 %v464_v50 }
  0x5a   :  { %381 = vmatmul.mubr.f32.vlgmr.msra.gmra.mrb[0].mxu0 %v57_v47 }
  0x62   :  { %v480_v61 = vpop.eup %479 }
  0x63   :  { %v256_v63 = vmul.f32 0.6931472, %v480_v61 }
  0x65   :  { %v257_v1 = vsub.f32 0.0, %v256_v63 }
 0x12d   :  { %v140_v51 = vpop.f32.mrb[0].mxu0 }
 0x12e   :  { %v144_v52 = vmax.f32 %v140_v51, 0.0  ;;  %v382_v53 = vpop.f32.mrb[1].mxu0 }
 0x130   :  { %416 = vmatmul.mubr.f32.vlgmr.msra.gmra.mrb[0].mxu1 %v144_v52 }
 0x203   :  { %v227_v0 = vpop.f32.mrb[0].mxu1 }
 0x204   :  { %v234_v2 = vmax.f32 %v227_v0, 0.0  ;;  %v417_v3 = vpop.f32.mrb[1].mxu1 }
 0x206   :  { %v235_v4 = vsel %vm233_vm1, %v234_v2, -1e+30 }
 0x207   :  { %v258_v5 = vadd.f32 %v257_v1, %v235_v4  ;;  %v237_v8 = vsel %vm236_vm2, %v235_v4, -inf }
 0x209   :  { %v259_v6 = vsel %vm233_vm1, %v258_v5, -1e+30 }
 0x20a   :  { %v260_v7 = vsel %vm236_vm2, %v259_v6, -inf }
 0x20b   :  { %261 = vmax.xlane.f32.xlu0 %v260_v7 }
 0x20f   :  { %238 = vmax.xlane.f32.xlu0 %v237_v8 }
 0x298   :  { %v262_v9 = vpop.xlane.xlu0 %261 }
 0x299   :  { %vm263_vm3 = vcmp.ge.f32.partialorder %v259_v6, %v262_v9 }
 0x29a   :  { %v264_v10 = vsel %vm263_vm3, %v675_v62, 128 }
 0x29b   :  { %v265_v11 = vsel %vm236_vm2, %v264_v10, 2147483647 }
 0x29c   :  { %v239_v12 = vpop.xlane.xlu0 %238  ;;  %v267_v13 = vshra.s32 %v265_v11, 16  ;;  %v266_v20 = vand.u32 65535, %v265_v11 }
 0x29d   :  { %v240_v14 = vsub.f32 %v235_v4, %v239_v12 }
 0x29e   :  { %v269_v15 = vcvt.s32.f32 %v267_v13  ;;  %v268_v22 = vcvt.s32.f32 %v266_v20 }
 0x29f   :  { %v241_v16 = vmul.f32 1.442695, %v240_v14 }
 0x2a0   :  { %270 = vmin.xlane.f32.xlu1 %v269_v15 }
 0x2a1   :  { %481 = vpow2.f32 %v241_v16 }
 0x2ab   :  { %v482_v17 = vpop.eup %481 }
 0x2ac   :  { %v243_v18 = vsel %vm236_vm2, %v482_v17, 0.0 }
 0x2ad   :  { %244 = vadd.xlane.f32.xlu1 %v243_v18 }
 0x32d   :  { %v271_v21 = vpop.xlane.xlu1 %270 }
 0x32e   :  { %vm272_vm4 = vcmp.eq.f32.partialorder %v269_v15, %v271_v21  ;;  %v277_v26 = vcvt.f32.s32 %v271_v21 }
 0x32f   :  { %v273_v23 = vsel %vm272_vm4, %v268_v22, inf }
 0x330   :  { %274 = vmin.xlane.f32.xlu0 %v273_v23  ;;  %v278_v29 = vshll.u32 %v277_v26, 16 }
 0x33a   :  { %v245_v24 = vpop.xlane.xlu1 %244 }
 0x33b   :  { %483 = vlog2.f32 %v245_v24 }
 0x345   :  { %v484_v25 = vpop.eup %483 }
 0x346   :  { %290 = vperm.xlu0 %476, %v227_v0   ;;  %v247_v27 = vmul.f32 0.6931472, %v484_v25 }
 0x348   :  { %v248_v32 = vsub.f32 %v240_v14, %v247_v27 }
 0x3bd   :  { %v275_v28 = vpop.xlane.xlu0 %274 }
 0x3be   :  { %v276_v30 = vcvt.f32.s32 %v275_v28 }
 0x3c0   :  { %v279_v31 = vadd.s32 %v278_v29, %v276_v30 }
 0x3c2   :  { %vm280_vm5 = vcmp.eq.s32.totalorder %v675_v62, %v279_v31  ;;  %v295_v36 = vcvt.s32.f32 %v279_v31 }
 0x3c3   :  { %v281_v33 = vsel %vm280_vm5, %v248_v32, 0.0 }
 0x3c4   :  { %v282_v34 = vsel %vm236_vm2, %v281_v33, 0.0 }
 0x3c5   :  { %283 = vadd.xlane.f32.xlu1 %v282_v34  ;;  %v291_v37 = vpop.permute.xlu0 %290 }
 0x452   :  { %v284_v35 = vpop.xlane.xlu1 %283 }
 0x453   :  { %v286_v38 = vsel %vm285_vm6, %v284_v35, 0.0 }
 0x454   :  { %v293_v39 = vsel %vm287_vm7, %v291_v37, %v286_v38 }
 0x455   :  { %v296_v40 = vsel %vm294_vm8, %v295_v36, %v293_v39 }
 0x456   :  { %297 = vst [vmem:[#allocation8] sm:$0x1] %v296_v40 }
 0x457   :  { %562 = shalt.err (!%p559_p0)
}
 0x458   :  { %s563_s6 = scalar_lea.hbm %s704_s4, 16 }
 0x459   :  { %p564_p1 = scmp.ne.s32.totalorder %s704_s4, %s563_s6  ;;  %p567_p2 = scmp.lt.u32.totalorder %s563_s6, %s704_s4 }
 0x45b   :  { %p569_p3 = pnand %p567_p2, %p564_p1 }
 0x45d   :  { %572 = shalt.err (!%p569_p3)
}
 0x45e   :  { %307 = dma.vmem_to_hbm [thread:$0]  %s305_s26, 16, %s704_s4, [#allocation4]  }
 0x45f   :  { %577 = dma.done.wait [#allocation4], 16  }
 0x460   :  { %578 = vsyncadd [#allocation4], 4294967280 }
 0x461   :  { %311 = vsyncpa [#allocation3], 1 }
 0x462   :  { %312 = vsyncpa [#allocation6], 1 }
 0x463   :  { %313 = vsyncpa [#allocation4], 1 }

</bundles_post_ra>
